<compile_context>
chip_gen: v6e
topology: v6e:2x2x1
jax: 0.10.0
libtpu: 0.0.40
codegen_flags: <defaults>
</compile_context>

<pallas_src>
import math

import jax
import jax.numpy as jnp
from jax import lax
from jax.experimental import pallas as pl
from jax.experimental.pallas import tpu as pltpu


# ----------------------------------------------------------------------------
# Kernel bodies.  Grid = (P // pt, IN // kt); each step handles pt population
# members and one K (IN) slice.  Reduction axis (k) is last and "arbitrary".
# ----------------------------------------------------------------------------
def _vlin_kernel(x_ref, w_ref, b_ref, o_ref, acc_ref):
    k = pl.program_id(1)

    @pl.when(k == 0)
    def _():
        acc_ref[...] = jnp.zeros_like(acc_ref)

    # x_ref: (pt, B, kt), w_ref: (pt, kt, OUT); f32 accumulation on the MXU.
    acc_ref[...] += jnp.einsum("pbi,pio->pbo", x_ref[...], w_ref[...],
                               preferred_element_type=jnp.float32)

    @pl.when(k == pl.num_programs(1) - 1)
    def _():
        y = acc_ref[...] + b_ref[...].astype(jnp.float32)
        o_ref[...] = y.astype(o_ref.dtype)


def _make_vlin_ln_kernel(eps: float):
    def _kernel(x_ref, w_ref, b_ref, g_ref, beta_ref, o_ref, acc_ref):
        k = pl.program_id(1)

        @pl.when(k == 0)
        def _():
            acc_ref[...] = jnp.zeros_like(acc_ref)

        acc_ref[...] += jnp.einsum("pbi,pio->pbo", x_ref[...], w_ref[...],
                                   preferred_element_type=jnp.float32)

        @pl.when(k == pl.num_programs(1) - 1)
        def _():
            y = acc_ref[...] + b_ref[...].astype(jnp.float32)
            # LayerNorm over the last (OUT) axis; two-pass variance in f32.
            mean = jnp.mean(y, axis=-1, keepdims=True)
            centered = y - mean
            var = jnp.mean(centered * centered, axis=-1, keepdims=True)
            y_hat = centered * lax.rsqrt(var + eps)      # rsqrt -> EUP slot
            out = (y_hat * g_ref[...].astype(jnp.float32)
                   + beta_ref[...].astype(jnp.float32))
            o_ref[...] = out.astype(o_ref.dtype)
    return _kernel


# ----------------------------------------------------------------------------
# Generation-aware tiling helpers
# ----------------------------------------------------------------------------
def _vmem_budget_bytes() -> int:
    """Per-TensorCore VMEM budget (leave ~20% headroom for compiler scratch)."""
    try:
        cap = int(pltpu.get_tpu_info().vmem_capacity_bytes)
    except Exception:
        cap = 64 << 20   # conservative fallback == v7x per-TC physical VMEM
    return int(cap * 0.80)


def _divisors_desc(n: int):
    ds = set()
    for i in range(1, int(math.isqrt(n)) + 1):
        if n % i == 0:
            ds.add(i)
            ds.add(n // i)
    return sorted(ds, reverse=True)


def _choose_tiles(P, B, IN, OUT, x_isz, w_isz, b_isz, out_isz, extra_bytes,
                  budget):
    """Pick (pt, kt): the largest population tile (and K tile) whose
    double-buffered working set fits the per-generation VMEM budget.

    pt is capped at P//2 so the grid has >= 2 steps (keeps both v7x
    TensorCores busy; costs one negligible extra step on v5e/v6e).
    kt is IN (no K loop) whenever it fits; otherwise a divisor of IN that is a
    multiple of 128 (BlockSpec (8,128) rule for a partial last dim).
    """
    pt_cap = max(1, P // 2)

    def working_set(pt, kt):
        in_b = pt * B * kt * x_isz + pt * kt * OUT * w_isz + pt * OUT * b_isz
        out_b = pt * B * OUT * out_isz
        acc_b = pt * B * OUT * 4            # f32 accumulator (single buffered)
        return 2 * (in_b + out_b + extra_bytes) + acc_b + (1 << 20)

    kt_opts = [IN] + [d for d in _divisors_desc(IN)
                      if d % 128 == 0 and d != IN]
    for kt in kt_opts:
        for pt in _divisors_desc(P):
            if pt > pt_cap:
                continue
            if working_set(pt, kt) <= budget:
                return pt, kt
    return 1, kt_opts[-1]                    # last-resort fallback


# ----------------------------------------------------------------------------
# Wrappers (no dtype casting here -- store weights in bf16 at init if desired)
# ----------------------------------------------------------------------------
def vectorized_linear(x, weight, bias):
    """out[p] = x[p] @ weight[p] + bias[p]."""
    P, B, IN = x.shape
    OUT = weight.shape[-1]
    assert weight.shape == (P, IN, OUT)
    assert bias.shape == (P, 1, OUT)
    out_dtype = x.dtype
    out_isz = jnp.dtype(out_dtype).itemsize

    budget = _vmem_budget_bytes()
    pt, kt = _choose_tiles(P, B, IN, OUT,
                           x.dtype.itemsize, weight.dtype.itemsize,
                           bias.dtype.itemsize, out_isz, 0, budget)
    grid = (P // pt, IN // kt)

    cost = pl.CostEstimate(
        flops=2 * P * B * IN * OUT,
        transcendentals=0,
        bytes_accessed=(x.size * x.dtype.itemsize
                        + weight.size * weight.dtype.itemsize
                        + bias.size * bias.dtype.itemsize
                        + P * B * OUT * out_isz),
    )

    return pl.pallas_call(
        _vlin_kernel,
        out_shape=jax.ShapeDtypeStruct((P, B, OUT), out_dtype),
        grid_spec=pltpu.PrefetchScalarGridSpec(
            num_scalar_prefetch=0,
            grid=grid,
            in_specs=[
                pl.BlockSpec((pt, B, kt), lambda p, k: (p, 0, k)),
                pl.BlockSpec((pt, kt, OUT), lambda p, k: (p, k, 0)),
                pl.BlockSpec((pt, 1, OUT), lambda p, k: (p, 0, 0)),
            ],
            out_specs=pl.BlockSpec((pt, B, OUT), lambda p, k: (p, 0, 0)),
            scratch_shapes=[pltpu.VMEM((pt, B, OUT), jnp.float32)],
        ),
        compiler_params=pltpu.CompilerParams(
            dimension_semantics=("parallel", "arbitrary"),
            vmem_limit_bytes=budget,
        ),
        cost_estimate=cost,
    )(x, weight, bias)


def vectorized_linear_layernorm(x, weight, bias, ln_gamma, ln_beta, eps):
    """out[p] = LayerNorm(x[p] @ weight[p] + bias[p]) with shared gamma/beta."""
    P, B, IN = x.shape
    OUT = weight.shape[-1]
    assert weight.shape == (P, IN, OUT)
    assert bias.shape == (P, 1, OUT)
    out_dtype = x.dtype
    out_isz = jnp.dtype(out_dtype).itemsize

    g2 = ln_gamma.reshape(1, OUT).astype(jnp.float32)
    b2 = ln_beta.reshape(1, OUT).astype(jnp.float32)

    budget = _vmem_budget_bytes()
    pt, kt = _choose_tiles(P, B, IN, OUT,
                           x.dtype.itemsize, weight.dtype.itemsize,
                           bias.dtype.itemsize, out_isz, 2 * OUT * 4, budget)
    grid = (P // pt, IN // kt)

    cost = pl.CostEstimate(
        flops=2 * P * B * IN * OUT + 8 * P * B * OUT,
        transcendentals=P * B,                      # one rsqrt per (p, b) row
        bytes_accessed=(x.size * x.dtype.itemsize
                        + weight.size * weight.dtype.itemsize
                        + bias.size * bias.dtype.itemsize
                        + 2 * OUT * 4
                        + P * B * OUT * out_isz),
    )

    return pl.pallas_call(
        _make_vlin_ln_kernel(float(eps)),
        out_shape=jax.ShapeDtypeStruct((P, B, OUT), out_dtype),
        grid_spec=pltpu.PrefetchScalarGridSpec(
            num_scalar_prefetch=0,
            grid=grid,
            in_specs=[
                pl.BlockSpec((pt, B, kt), lambda p, k: (p, 0, k)),
                pl.BlockSpec((pt, kt, OUT), lambda p, k: (p, k, 0)),
                pl.BlockSpec((pt, 1, OUT), lambda p, k: (p, 0, 0)),
                pl.BlockSpec((1, OUT), lambda p, k: (0, 0)),
                pl.BlockSpec((1, OUT), lambda p, k: (0, 0)),
            ],
            out_specs=pl.BlockSpec((pt, B, OUT), lambda p, k: (p, 0, 0)),
            scratch_shapes=[pltpu.VMEM((pt, B, OUT), jnp.float32)],
        ),
        compiler_params=pltpu.CompilerParams(
            dimension_semantics=("parallel", "arbitrary"),
            vmem_limit_bytes=budget,
        ),
        cost_estimate=cost,
    )(x, weight, bias, g2, b2)


# ----------------------------------------------------------------------------
# Deterministic parameter init (mirrors the torch init bounds)
# ----------------------------------------------------------------------------
def init_params(key, population_size, in_features, out_features):
    # torch: kaiming_uniform_(a=sqrt(5)) per (IN, OUT) slice
    #   fan_in (torch convention for a 2-D tensor) = size(1) = out_features
    #   bound = sqrt(2/(1+5)) * sqrt(3/fan_in) = 1/sqrt(out_features)
    kw, kb = jax.random.split(key)
    w_bound = 1.0 / math.sqrt(out_features)
    weight = jax.random.uniform(
        kw, (population_size, in_features, out_features),
        minval=-w_bound, maxval=w_bound, dtype=jnp.float32)
    b_bound = 1.0 / math.sqrt(out_features)
    bias = jax.random.uniform(
        kb, (population_size, 1, out_features),
        minval=-b_bound, maxval=b_bound, dtype=jnp.float32)
    ln_gamma = jnp.ones((out_features,), jnp.float32)
    ln_beta = jnp.zeros((out_features,), jnp.float32)
    return weight, bias, ln_gamma, ln_beta


# ----------------------------------------------------------------------------
# Main
# ----------------------------------------------------------------------------
if __name__ == "__main__":
    P, B, IN, OUT = 16, 8, 32, 32    # population=16, batch=8, hidden dims=32

    key = jax.random.PRNGKey(0)
    kx, kp = jax.random.split(key)
    x = jax.random.normal(kx, (P, B, IN), dtype=jnp.float32)
    weight, bias, ln_gamma, ln_beta = init_params(kp, P, IN, OUT)

    # Persistent storage dtype: cast the weights to bf16 ONCE at init (this is
    # the weight-streaming bandwidth win); x stays f32, bias/gamma/beta stay
    # f32.  No casts happen inside the per-call wrappers.
    weight_store = weight.astype(jnp.bfloat16)
    w_ref_f32 = weight_store.astype(jnp.float32)   # what the kernel sees, in f32

    # --- path 1: use_layer_norm=False (module default) ---
    out = jax.block_until_ready(vectorized_linear(x, weight_store, bias))
    ref = jnp.einsum("pbi,pio->pbo", x, w_ref_f32) + bias
    assert out.shape == (P, B, OUT)
    assert bool(jnp.all(jnp.isfinite(out)))
    assert jnp.allclose(out, ref, atol=1e-4, rtol=1e-4)

    # --- path 2: use_layer_norm=True ---
    # NOTE: eps == population_size, faithfully mirroring
    # torch.nn.LayerNorm(out_features, population_size) in the source module.
    eps = float(P)
    out_ln = jax.block_until_ready(
        vectorized_linear_layernorm(x, weight_store, bias, ln_gamma, ln_beta,
                                    eps))
    y = jnp.einsum("pbi,pio->pbo", x, w_ref_f32) + bias
    mu = jnp.mean(y, axis=-1, keepdims=True)
    var = jnp.mean((y - mu) ** 2, axis=-1, keepdims=True)
    ref_ln = (y - mu) / jnp.sqrt(var + eps) * ln_gamma + ln_beta
    assert out_ln.shape == (P, B, OUT)
    assert bool(jnp.all(jnp.isfinite(out_ln)))
    assert jnp.allclose(out_ln, ref_ln, atol=1e-4, rtol=1e-4)

    print("KERNEL_OK")
</pallas_src>

<mosaic_0001>
module attributes {stable_mosaic.version = 11 : i64} {
  func.func @_vlin_kernel(%arg0: i32, %arg1: i32, %arg2: memref<8x8x32xf32, #tpu.memory_space<vmem>>, %arg3: memref<8x32x32xbf16, #tpu.memory_space<vmem>>, %arg4: memref<8x1x32xf32, #tpu.memory_space<vmem>>, %arg5: memref<8x8x32xf32, #tpu.memory_space<vmem>>, %arg6: memref<8x8x32xf32, #tpu.memory_space<vmem>>) attributes {dimension_semantics = [#tpu.dimension_semantics<parallel>, #tpu.dimension_semantics<arbitrary>], iteration_bounds = array<i64: 2, 1>, scalar_prefetch = 0 : i64, scratch_operands = 1 : i64, tpu.core_type = #tpu.core_type<tc>, window_params = [{transform_indices = @transform_0, window_bounds = array<i64: 8, 8, 32>}, {transform_indices = @transform_1, window_bounds = array<i64: 8, 32, 32>}, {transform_indices = @transform_2, window_bounds = array<i64: 8, 1, 32>}, {transform_indices = @transform_3, window_bounds = array<i64: 8, 8, 32>}]} {
    %c0_i32 = arith.constant 0 : i32
    %0 = arith.cmpi eq, %arg1, %c0_i32 : i32
    %1 = arith.extui %0 : i1 to i32
    %c0_i32_0 = arith.constant 0 : i32
    %2 = arith.cmpi ne, %1, %c0_i32_0 : i32
    scf.if %2 {
      %cst_14 = arith.constant 0.000000e+00 : f32
      %12 = vector.broadcast %cst_14 : f32 to vector<8x8x32xf32>
      %c0_15 = arith.constant 0 : index
      %c0_16 = arith.constant 0 : index
      %c0_17 = arith.constant 0 : index
      %13 = vector.load %arg6[%c0_15, %c0_16, %c0_17] : memref<8x8x32xf32, #tpu.memory_space<vmem>>, vector<8x8x32xf32>
      tpu.vector_store %arg6[%c0_15, %c0_16, %c0_17], %12 {strides = array<i32>} : memref<8x8x32xf32, #tpu.memory_space<vmem>>, vector<8x8x32xf32>,
    } else {
    }
    %c0 = arith.constant 0 : index
    %c0_1 = arith.constant 0 : index
    %c0_2 = arith.constant 0 : index
    %3 = vector.load %arg6[%c0, %c0_1, %c0_2] : memref<8x8x32xf32, #tpu.memory_space<vmem>>, vector<8x8x32xf32>
    %c0_3 = arith.constant 0 : index
    %c0_4 = arith.constant 0 : index
    %c0_5 = arith.constant 0 : index
    %4 = vector.load %arg2[%c0_3, %c0_4, %c0_5] : memref<8x8x32xf32, #tpu.memory_space<vmem>>, vector<8x8x32xf32>
    %c0_6 = arith.constant 0 : index
    %c0_7 = arith.constant 0 : index
    %c0_8 = arith.constant 0 : index
    %5 = vector.load %arg3[%c0_6, %c0_7, %c0_8] : memref<8x32x32xbf16, #tpu.memory_space<vmem>>, vector<8x32x32xbf16>
    "tpu.trace_start"() <{level = 10 : i32, message = "pbi,pio->pbo"}> : () -> ()
    %cst = arith.constant dense<0.000000e+00> : vector<8x8x32xf32>
    %6 = tpu.matmul %4, %5, %cst {dimension_numbers = #tpu.dot_dimension_numbers<[2], [1], [1], [2], [0, 0, 0, 1, 1, 2], [0], [0]>} : vector<8x8x32xf32>, vector<8x32x32xbf16>, vector<8x8x32xf32> -> vector<8x8x32xf32>
    "tpu.trace_stop"() : () -> ()
    %7 = arith.addf %3, %6 : vector<8x8x32xf32>
    %c0_9 = arith.constant 0 : index
    %c0_10 = arith.constant 0 : index
    %c0_11 = arith.constant 0 : index
    %8 = vector.load %arg6[%c0_9, %c0_10, %c0_11] : memref<8x8x32xf32, #tpu.memory_space<vmem>>, vector<8x8x32xf32>
    tpu.vector_store %arg6[%c0_9, %c0_10, %c0_11], %7 {strides = array<i32>} : memref<8x8x32xf32, #tpu.memory_space<vmem>>, vector<8x8x32xf32>,
    %c0_i32_12 = arith.constant 0 : i32
    %9 = arith.cmpi eq, %arg1, %c0_i32_12 : i32
    %10 = arith.extui %9 : i1 to i32
    %c0_i32_13 = arith.constant 0 : i32
    %11 = arith.cmpi ne, %10, %c0_i32_13 : i32
    scf.if %11 {
      %c0_14 = arith.constant 0 : index
      %c0_15 = arith.constant 0 : index
      %c0_16 = arith.constant 0 : index
      %12 = vector.load %arg6[%c0_14, %c0_15, %c0_16] : memref<8x8x32xf32, #tpu.memory_space<vmem>>, vector<8x8x32xf32>
      %c0_17 = arith.constant 0 : index
      %c0_18 = arith.constant 0 : index
      %c0_19 = arith.constant 0 : index
      %13 = vector.load %arg4[%c0_17, %c0_18, %c0_19] : memref<8x1x32xf32, #tpu.memory_space<vmem>>, vector<8x1x32xf32>
      %14 = vector.broadcast %13 : vector<8x1x32xf32> to vector<8x8x32xf32>
      %15 = arith.addf %12, %14 : vector<8x8x32xf32>
      %c0_20 = arith.constant 0 : index
      %c0_21 = arith.constant 0 : index
      %c0_22 = arith.constant 0 : index
      %16 = vector.load %arg5[%c0_20, %c0_21, %c0_22] : memref<8x8x32xf32, #tpu.memory_space<vmem>>, vector<8x8x32xf32>
      tpu.vector_store %arg5[%c0_20, %c0_21, %c0_22], %15 {strides = array<i32>} : memref<8x8x32xf32, #tpu.memory_space<vmem>>, vector<8x8x32xf32>,
    } else {
    }
    return
  }
  func.func @transform_0(%arg0: i32, %arg1: i32) -> (i32, i32, i32) {
    %c0_i32 = arith.constant 0 : i32
    %c0_i32_0 = arith.constant 0 : i32
    return %arg0, %c0_i32, %arg1 : i32, i32, i32
  }
  func.func @transform_1(%arg0: i32, %arg1: i32) -> (i32, i32, i32) {
    %c0_i32 = arith.constant 0 : i32
    %c0_i32_0 = arith.constant 0 : i32
    return %arg0, %arg1, %c0_i32 : i32, i32, i32
  }
  func.func @transform_2(%arg0: i32, %arg1: i32) -> (i32, i32, i32) {
    %c0_i32 = arith.constant 0 : i32
    %c0_i32_0 = arith.constant 0 : i32
    %c0_i32_1 = arith.constant 0 : i32
    return %arg0, %c0_i32, %c0_i32_0 : i32, i32, i32
  }
  func.func @transform_3(%arg0: i32, %arg1: i32) -> (i32, i32, i32) {
    %c0_i32 = arith.constant 0 : i32
    %c0_i32_0 = arith.constant 0 : i32
    %c0_i32_1 = arith.constant 0 : i32
    return %arg0, %c0_i32, %c0_i32_0 : i32, i32, i32
  }
}

</mosaic_0001>

<bundles_post_ra>
// kernel: tpu_custom_call.1
= control target key start
LH: loop header
LB: loop body
LE: loop exit
PB: predicated region body
PF: predicated region fallthrough
CT: control target
= control target key end

     0   :  { %s1781_s0 = inlined_call_operand.hbm [shape: f32[16,8,32], index: 0, kind: input, shape index: {}]   ;;  %s1782_s1 = inlined_call_operand.hbm [shape: bf16[16,32,32], index: 1, kind: input, shape index: {}]   ;;  %s1783_s2 = inlined_call_operand.hbm [shape: f32[16,1,32], index: 2, kind: input, shape index: {}]   ;;  %s1784_s3 = inlined_call_operand.hbm [shape: f32[16,8,32], index: 3, kind: output, shape index: {}]  }
   0x1   :  { %1787 = sst [smem:[#allocation16_spill]] %s1781_s0 }
   0x2   :  { %1788 = sst [smem:[#allocation17_spill]] %s1782_s1 }
   0x3   :  { %8 = vsyncpa [#allocation4], 0 }
   0x4   :  { %10 = vsyncpa [#allocation4 + $0x1], 0 }
   0x5   :  { %11 = vsyncpa [#allocation7], 0 }
   0x6   :  { %13 = vsyncpa [#allocation7 + $0x1], 0 }
   0x7   :  { %14 = vsyncpa [#allocation5], 0 }
   0x8   :  { %16 = vsyncpa [#allocation5 + $0x1], 0  ;;  %s1463_s12 = smov 0   ;;  %s1465_s13 = smov 0  }
   0x9   :  { %s1467_s14 = smov 0   ;;  %s1469_s15 = smov 0  }
   0xa   :  { %s1471_s16 = smov 0   ;;  %s1473_s17 = smov 0  }
   0xb LB: > { %1789 = sst [smem:[#allocation13_spill]] %s1415_s14  ;;  %s1494_s18 = sadd.s32 4294967295, %s1427_s17   ;;  %s1427_s17 = sphi %s1473_s17, %s22_s17   ;;  %s1423_s16 = sphi %s1471_s16, %s1806_s16   ;;  %s1419_s15 = sphi %s1469_s15, %s1805_s15   ;;  %s1415_s14 = sphi %s1467_s14, %s1801_s14   ;;  %s1411_s13 = sphi %s1465_s13, %s1804_s13   ;;  %s1407_s12 = sphi %s1463_s12, %s1803_s12  }
   0xc   : > { %s1021_s19 = sadd.s32 4294967294, %s1427_s17   ;;  %s34_s20 = sadd.s32 1, %s1423_s16 }
   0xd   : > { %s43_s21 = sadd.s32 1, %s1415_s14  ;;  %p36_p0 = scmp.ge.s32.totalorder %s34_s20, 2 }
   0xe   : > { %p50_p1 = scmp.ne.s32.totalorder %s1415_s14, %s1411_s13  ;;  %p51_p2 = scmp.eq.s32.totalorder %s1427_s17, 0 }
   0xf   : > { %p56_p3 = scmp.ne.s32.totalorder %s1411_s13, %s1407_s12  ;;  %s1808_s20 = smov (%p36_p0, %s34_s20), 0 }
  0x10   : > { %1790 = sst [smem:[#allocation14_spill]] %s1808_s20  ;;  %p1506_p4 = por %p51_p2, %p50_p1 }
  0x11   : > { %p57_p5 = scmp.eq.s32.totalorder %s1494_s18, 0  ;;  %s38_s23 = ssub.s32 %s1423_s16, %s1808_s20 }
  0x12   : > { %p134_p6 = scmp.eq.s32.totalorder %s1494_s18, 1  ;;  %p41_p7 = scmp.eq.s32.totalorder %s38_s23, 0 }
  0x13   : > { %p1514_p8 = por %p57_p5, %p56_p3  ;;  %p140_p10 = scmp.eq.s32.totalorder %s1021_s19, 1 }
  0x14   : > { %p1518_p9 = por %p134_p6, %p50_p1  ;;  %p1023_p12 = scmp.ge.s32.totalorder %s1427_s17, 2 }
  0x15   : > { %s1523_s26 = scalar_select %p41_p7, %s1415_s14, %s43_s21  }
  0x16   : > { %p1525_p11 = por %p140_p10, %p56_p3  ;;  %p1183_p13 = scmp.lt.s32.totalorder %s1427_s17, 2 }
  0x17   : > { %1794 = sst [smem:[#allocation15_spill]] %s1523_s26  ;;  %s1532_s28 = sand.u32 1, %s1415_s14  }
  0x18   : > { %s182_s29 = sand.u32 1, %s1427_s17   ;;  %s1027_s30 = sshll.u32 %s1532_s28, 7 }
  0x19   : > { %p1538_p0 = pnand %p1183_p13, %p1506_p4  ;;  %s1078_s5 = sshll.u32 %s1423_s16, 11 }
  0x1a   : > { %s1797_s1 = sld [smem:[#allocation17_spill]]  ;;  %s186_s9 = scalar_lea.vmem [#allocation6], %s1027_s30 }
  0x1b   : > { %s196_s10 = sshll.u32 %s186_s9, 4  ;;  %s1546_s11 = scalar_lea.sflag [#allocation7], %s182_s29  ;;  %s197_s10 = int_to_ptr.vmem [resolvable:$true] %s196_s10 }
  0x1c   : > { %p1261_p1 = pneg %p1538_p0  ;;  %s1272_s19 = scalar_lea.vmem %s197_s10, 2048 }
  0x1d   : > { %p1273_p2 = scmp.ne.s32.totalorder %s197_s10, %s1272_s19  ;;  %s1429_s21 = smov [#allocation6]  }
  0x1e   : > { %s1277_s22 = sshll.u32 %s1429_s21, 4  ;;  %s1278_s22 = int_to_ptr.vmem [resolvable:$false] %s1277_s22 }
  0x1f   : > { %p1275_p3 = pnand %p1273_p2, %p1261_p1  ;;  %s1279_s23 = scalar_lea.vmem %s1278_s22, 4096 }
  0x20   : > { %s195_s8 = scalar_lea.hbm %s1797_s1, %s1078_s5  ;;  %p1280_p5 = scmp.lt.s32.totalorder %s197_s10, %s1278_s22 }
  0x21   : > { %p1276_p4 = pneg %p1275_p3  ;;  %p1281_p6 = scmp.lt.s32.totalorder %s1279_s23, %s1272_s19 }
  0x23   : > { %p1282_p7 = por %p1281_p6, %p1280_p5 }
  0x25   : > { %p1283_p10 = pnand %p1282_p7, %p1276_p4 }
  0x27   : > { %1286 = shalt.err (!%p1283_p10)
}
  0x28   : > { %s1430_s30 = smov 64   ;;  %s1431_s29 = smov 4  }
  0x29   : > { %1175 = dma.hbm_to_vmem [thread:$0]  (!%p1538_p0), %s195_s8, 2048, %s197_s10, %s1546_s11, %s1430_s30, %s1430_s30, %s1431_s29  }
  0x2a   : > { %p1034_p13 = scmp.ge.s32.totalorder %s1427_s17, 1  ;;  %p225_p2 = scmp.lt.s32.totalorder %s1427_s17, 3 }
  0x2b   : > { %s1024_s6 = sshll.u32 %s1532_s28, 6  ;;  %s1076_s7 = sshll.u32 %s1423_s16, 10 }
  0x2c   : > { %p1558_p3 = pnand %p1034_p13, %p225_p2  ;;  %s1799_s0 = sld [smem:[#allocation16_spill]] }
  0x2d   : > { %s164_s22 = scalar_lea.vmem [#allocation3], %s1024_s6  ;;  %s161_s1 = scalar_lea.sflag [#allocation4], %s1532_s28 }
  0x2e   : > { %s172_s23 = sshll.u32 %s164_s22, 4  ;;  %s1432_s8 = smov [#allocation3]   ;;  %s173_s23 = int_to_ptr.vmem [resolvable:$true] %s172_s23 }
  0x2f   : > { %s1300_s20 = scalar_lea.vmem %s173_s23, 1024  ;;  %s1305_s10 = sshll.u32 %s1432_s8, 4  ;;  %s1306_s10 = int_to_ptr.vmem [resolvable:$false] %s1305_s10 }
  0x30   : > { %p1301_p4 = scmp.ne.s32.totalorder %s173_s23, %s1300_s20  ;;  %s1307_s30 = scalar_lea.vmem %s1306_s10, 2048 }
  0x31   : > { %p1308_p7 = scmp.lt.s32.totalorder %s173_s23, %s1306_s10  ;;  %p1309_p10 = scmp.lt.s32.totalorder %s1307_s30, %s1300_s20 }
  0x32   : > { %s171_s21 = scalar_lea.hbm %s1799_s0, %s1076_s7  ;;  %p1303_p5 = pnand %p1301_p4, %p1261_p1 }
  0x33   : > { %p1310_p13 = por %p1309_p10, %p1308_p7 }
  0x34   : > { %p1304_p6 = pneg %p1303_p5 }
  0x36   : > { %p1311_p2 = pnand %p1310_p13, %p1304_p6 }
  0x38   : > { %1314 = shalt.err (!%p1311_p2)
}
  0x39   : > { %s1433_s29 = smov 128   ;;  %s1434_s6 = smov 8  }
  0x3a   : > { %1172 = dma.hbm_to_vmem [thread:$0]  (!%p1538_p0), %s171_s21, 1024, %s173_s23, %s161_s1, %s1433_s29, %s1433_s29, %s1434_s6  }
  0x3b   : > { %s1031_s7 = sshll.u32 %s1532_s28, 3  ;;  %s1079_s9 = sshll.u32 %s1423_s16, 7 }
  0x3c   : > { %s216_s8 = scalar_lea.hbm %s1783_s2, %s1079_s9  ;;  %s210_s0 = scalar_lea.vmem [#allocation8], %s1031_s7 }
  0x3d   : > { %s217_s10 = sshll.u32 %s210_s0, 4  ;;  %s1435_s30 = smov [#allocation8]   ;;  %s218_s10 = int_to_ptr.vmem [resolvable:$true] %s217_s10 }
  0x3e   : > { %s1328_s20 = scalar_lea.vmem %s218_s10, 128  ;;  %s1333_s26 = sshll.u32 %s1435_s30, 4  ;;  %s1334_s26 = int_to_ptr.vmem [resolvable:$false] %s1333_s26 }
  0x3f   : > { %p1329_p4 = scmp.ne.s32.totalorder %s218_s10, %s1328_s20  ;;  %s1335_s14 = scalar_lea.vmem %s1334_s26, 256 }
  0x40   : > { %p1336_p7 = scmp.lt.s32.totalorder %s218_s10, %s1334_s26  ;;  %p1337_p10 = scmp.lt.s32.totalorder %s1335_s14, %s1328_s20 }
  0x41   : > { %p1331_p5 = pnand %p1329_p4, %p1261_p1 }
  0x42   : > { %p1338_p13 = por %p1337_p10, %p1336_p7 }
  0x43   : > { %p1332_p6 = pneg %p1331_p5 }
  0x45   : > { %p1339_p2 = pnand %p1338_p13, %p1332_p6 }
  0x47   : > { %1342 = shalt.err (!%p1339_p2)
}
  0x48   : > { %s1436_s1 = smov 16   ;;  %s1437_s0 = smov 1  }
  0x49   : > { %1178 = dma.hbm_to_vmem [thread:$0]  (!%p1538_p0), %s216_s8, 128, %s218_s10, %s1546_s11, %s1436_s1, %s1436_s1, %s1437_s0  }
  0x4a   : > { %229 = sbr.rel (%p1558_p3) target bundleno = 336 (0x150), region = 32  ;;  %s1587_s28 = sand.u32 (!%p1558_p3), 1, %s1411_s13  }
  0x4b   : > { %s1035_s14 = sshll.u32 (!%p1558_p3), %s1587_s28, 6  ;;  %s232_s26 = scalar_lea.sflag (!%p1558_p3), [#allocation4], %s1587_s28 }
  0x4c   : > { %s1593_s21 = scalar_lea.vmem (!%p1558_p3), [#allocation3], %s1035_s14 }
  0x4f   : > { %1394 = dma.done.wait (%p1514_p8), %s232_s26, 1024  }
  0x50   : > { %1396 = vsyncadd (%p1514_p8), %s232_s26, 4294966272  ;;  %s240_s4 = sand.u32 1, %s1494_s18   ;;  %s1036_s11 = sshll.u32 %s1587_s28, 7 }
  0x51   : > { %s241_s5 = scalar_lea.sflag [#allocation7], %s240_s4  ;;  %s1601_s23 = scalar_lea.vmem [#allocation6], %s1036_s11 }
  0x52   : > { %1398 = dma.done.wait (%p1514_p8), %s241_s5, 2176  }
  0x53   : > { %1400 = vsyncadd (%p1514_p8), %s241_s5, 4294965120  ;;  %vm296_vm0 = vcmask 261120   ;;  %v1438_v0 = vmov 0.0   ;;  %vm1439_vm1 = vmmov 0   ;;  %v1243_v1 = vld [vmem:[%s1601_s23 + $0x8] sm:$0xff]   ;;  %v1244_v2 = vld [vmem:[%s1601_s23 + $0x18] sm:$0xff]  }
  0x54   : > { %1105 = vmatprep.subr.bf16.mxu0 %v1438_v0  ;;  %1112 = vmatprep.subr.bf16.mxu1 %v1438_v0  ;;  %297 = vst.msk [vmem:[#allocation2] sm:$0xff] %vm296_vm0, %v1438_v0  ;;  %298 = vst.msk [vmem:[#allocation2 + $0x8] sm:$0xff] %vm296_vm0, %v1438_v0  ;;  %v1245_v3 = vld [vmem:[%s1601_s23] sm:$0xff]   ;;  %v1246_v4 = vld [vmem:[%s1601_s23 + $0x10] sm:$0xff]   ;;  %s1037_s18 = sshll.u32 %s1587_s28, 3  ;;  %s1698_s29 = scalar_lea.vmem [#allocation9], %s1035_s14 }
  0x55   : > { %299 = vst.msk [vmem:[#allocation2 + $0x10] sm:$0xff] %vm296_vm0, %v1438_v0  ;;  %300 = vst.msk [vmem:[#allocation2 + $0x18] sm:$0xff] %vm296_vm0, %v1438_v0  ;;  %1109 = vmatprep.mubr.msk.f32.mxu0 %vm1439_vm1, %v1438_v0  ;;  %1116 = vmatprep.mubr.msk.f32.mxu1 %vm1439_vm1, %v1438_v0  ;;  %v313_v5 = vld [vmem:[%s1593_s21] sm:$0xff]  ;;  %v314_v6 = vld [vmem:[%s1593_s21 + $0x8] sm:$0xff]  ;;  %s1690_s24 = scalar_lea.vmem [#allocation8], %s1037_s18  ;;  %s1080_s6 = sshll.u32 %s1419_s15, 10 }
  0x56   : > { %301 = vst.msk [vmem:[#allocation2 + $0x20] sm:$0xff] %vm296_vm0, %v1438_v0  ;;  %302 = vst.msk [vmem:[#allocation2 + $0x28] sm:$0xff] %vm296_vm0, %v1438_v0  ;;  %1106 = vmatpush3.bf16.msra.mxu0 %v1243_v1  ;;  %1113 = vmatpush3.bf16.msra.mxu1 %v1244_v2  ;;  %v1247_v7 = vld [vmem:[%s1601_s23 + $0x28] sm:$0xff]   ;;  %v1248_v8 = vld [vmem:[%s1601_s23 + $0x38] sm:$0xff]   ;;  %s891_s7 = sshll.u32 %s1698_s29, 4  ;;  %s1727_s22 = scalar_lea.hbm %s1784_s3, %s1080_s6  ;;  %s1729_s7 = int_to_ptr.vmem [resolvable:$true] %s891_s7 }
  0x57   : > { %303 = vst.msk [vmem:[#allocation2 + $0x30] sm:$0xff] %vm296_vm0, %v1438_v0  ;;  %304 = vst.msk [vmem:[#allocation2 + $0x38] sm:$0xff] %vm296_vm0, %v1438_v0  ;;  %1107 = vmatprep.subr.bf16.mxu0 %v1438_v0  ;;  %1114 = vmatprep.subr.bf16.mxu1 %v1438_v0  ;;  %v1249_v9 = vld [vmem:[%s1601_s23 + $0x20] sm:$0xff]   ;;  %v1250_v10 = vld [vmem:[%s1601_s23 + $0x30] sm:$0xff]   ;;  %s878_s15 = scalar_lea.sflag [#allocation5], %s1587_s28  ;;  %s1343_s8 = scalar_lea.vmem %s1729_s7, 1024 }
  0x58   : > { %v315_v11 = vld [vmem:[%s1593_s21 + $0x10] sm:$0xff]  ;;  %v316_v12 = vld [vmem:[%s1593_s21 + $0x18] sm:$0xff]  ;;  %v1251_v13 = vld [vmem:[%s1601_s23 + $0x48] sm:$0xff]   ;;  %p1344_p8 = scmp.ne.s32.totalorder %s1729_s7, %s1343_s8  ;;  %s1440_s10 = smov [#allocation9]  }
  0x59   : > { %v1252_v14 = vld [vmem:[%s1601_s23 + $0x58] sm:$0xff]   ;;  %v1253_v15 = vld [vmem:[%s1601_s23 + $0x40] sm:$0xff]   ;;  %v1254_v16 = vld [vmem:[%s1601_s23 + $0x50] sm:$0xff]   ;;  %s1347_s20 = sshll.u32 %s1440_s10, 4  ;;  %s1348_s20 = int_to_ptr.vmem [resolvable:$false] %s1347_s20 }
  0x5a   : > { %1108 = vmatpush3.bf16.msra.mxu0 %v1245_v3  ;;  %1115 = vmatpush3.bf16.msra.mxu1 %v1246_v4  ;;  %v317_v17 = vld [vmem:[%s1593_s21 + $0x20] sm:$0xff]  ;;  %v1255_v18 = vld [vmem:[%s1601_s23 + $0x68] sm:$0xff]   ;;  %v1256_v20 = vld [vmem:[%s1601_s23 + $0x78] sm:$0xff]   ;;  %p1345_p0 = pnand %p1344_p8, %p1518_p9  ;;  %s1349_s30 = scalar_lea.vmem %s1348_s20, 2048 }
  0x5b   : > { %1119 = vmatprep.subr.bf16.mxu0 %v1438_v0  ;;  %1126 = vmatprep.subr.bf16.mxu1 %v1438_v0  ;;  %v318_v19 = vld [vmem:[%s1593_s21 + $0x28] sm:$0xff]  ;;  %v1257_v21 = vld [vmem:[%s1601_s23 + $0x60] sm:$0xff]   ;;  %v1258_v22 = vld [vmem:[%s1601_s23 + $0x70] sm:$0xff]   ;;  %p1350_p3 = scmp.lt.s32.totalorder %s1729_s7, %s1348_s20  ;;  %p1351_p4 = scmp.lt.s32.totalorder %s1349_s30, %s1343_s8 }
  0x5c   : > { %v319_v23 = vld [vmem:[%s1593_s21 + $0x30] sm:$0xff]  ;;  %v320_v24 = vld [vmem:[%s1593_s21 + $0x38] sm:$0xff]  ;;  %v305_v25 = vld [vmem:[#allocation2] sm:$0xff]  ;;  %p1346_p1 = pneg %p1345_p0 }
  0x5d   : > { %1110 = vmatmul.mubr.msk.f32.vlgmr.msra.gmra.mxu0 %vm296_vm0, %v313_v5  ;;  %1117 = vmatmul.mubr.msk.f32.vlgmr.msra.gmra.mxu1 %vm296_vm0, %v314_v6  ;;  %v306_v26 = vld [vmem:[#allocation2 + $0x8] sm:$0xff]  ;;  %v307_v33 = vld [vmem:[#allocation2 + $0x10] sm:$0xff]  ;;  %v308_v34 = vld [vmem:[#allocation2 + $0x18] sm:$0xff]  ;;  %p1352_p5 = por %p1351_p4, %p1350_p3 }
  0x5e   : > { %1120 = vmatpush3.bf16.msra.mxu0 %v1247_v7  ;;  %1127 = vmatpush3.bf16.msra.mxu1 %v1248_v8  ;;  %v1063_v35 = vld [vmem:[%s1690_s24] ss:$0 sm:$0xff]  ;;  %v1064_v37 = vld [vmem:[%s1690_s24 + $0x1] ss:$0 sm:$0xff]  ;;  %v1065_v49 = vld [vmem:[%s1690_s24 + $0x2] ss:$0 sm:$0xff] }
  0x5f   : > { %1121 = vmatprep.subr.bf16.mxu0 %v1438_v0  ;;  %1128 = vmatprep.subr.bf16.mxu1 %v1438_v0  ;;  %v309_v47 = vld [vmem:[#allocation2 + $0x20] sm:$0xff]  ;;  %v310_v48 = vld [vmem:[#allocation2 + $0x28] sm:$0xff]  ;;  %v311_v61 = vld [vmem:[#allocation2 + $0x30] sm:$0xff]  ;;  %p1353_p6 = pnand %p1352_p5, %p1346_p1 }
  0x60   : > { %1123 = vmatprep.mubr.msk.f32.mxu0 %vm1439_vm1, %v1438_v0  ;;  %1130 = vmatprep.mubr.msk.f32.mxu1 %vm1439_vm1, %v1438_v0  ;;  %v1066_v51 = vld [vmem:[%s1690_s24 + $0x3] ss:$0 sm:$0xff]  ;;  %v312_v62 = vld [vmem:[#allocation2 + $0x38] sm:$0xff]  ;;  %v1067_v63 = vld [vmem:[%s1690_s24 + $0x4] ss:$0 sm:$0xff] }
  0x61   : > { %v1068_v1 = vld [vmem:[%s1690_s24 + $0x5] ss:$0 sm:$0xff] }
  0x62   : > { %1122 = vmatpush3.bf16.msra.mxu0 %v1249_v9  ;;  %1129 = vmatpush3.bf16.msra.mxu1 %v1250_v10 }
  0x63   : > { %1133 = vmatprep.subr.bf16.mxu0 %v1438_v0  ;;  %1140 = vmatprep.subr.bf16.mxu1 %v1438_v0 }
  0x65   : > { %1124 = vmatmul.mubr.msk.f32.vlgmr.msra.gmra.mxu0 %vm296_vm0, %v315_v11  ;;  %1131 = vmatmul.mubr.msk.f32.vlgmr.msra.gmra.mxu1 %vm296_vm0, %v316_v12  ;;  %v1069_v11 = vld [vmem:[%s1690_s24 + $0x6] ss:$0 sm:$0xff]  ;;  %v1070_v12 = vld [vmem:[%s1690_s24 + $0x7] ss:$0 sm:$0xff] }
  0x66   : > { %1134 = vmatpush3.bf16.msra.mxu0 %v1251_v13  ;;  %1141 = vmatpush3.bf16.msra.mxu1 %v1252_v14 }
  0x67   : > { %1135 = vmatprep.subr.bf16.mxu0 %v1438_v0  ;;  %1142 = vmatprep.subr.bf16.mxu1 %v1438_v0 }
  0x68   : > { %1137 = vmatprep.mubr.msk.f32.mxu0 %vm1439_vm1, %v1438_v0  ;;  %1144 = vmatprep.mubr.msk.f32.mxu1 %vm1439_vm1, %v1438_v0 }
  0x6a   : > { %1136 = vmatpush3.bf16.msra.mxu0 %v1253_v15  ;;  %1143 = vmatpush3.bf16.msra.mxu1 %v1254_v16 }
  0x6b   : > { %1147 = vmatprep.subr.bf16.mxu0 %v1438_v0  ;;  %1154 = vmatprep.subr.bf16.mxu1 %v1438_v0 }
  0x6d   : > { %1138 = vmatmul.mubr.msk.f32.vlgmr.msra.gmra.mxu0 %vm296_vm0, %v317_v17  ;;  %1145 = vmatmul.mubr.msk.f32.vlgmr.msra.gmra.mxu1 %vm296_vm0, %v318_v19 }
  0x6e   : > { %1148 = vmatpush3.bf16.msra.mxu0 %v1255_v18  ;;  %1155 = vmatpush3.bf16.msra.mxu1 %v1256_v20 }
  0x6f   : > { %1149 = vmatprep.subr.bf16.mxu0 %v1438_v0  ;;  %1156 = vmatprep.subr.bf16.mxu1 %v1438_v0 }
  0x70   : > { %1151 = vmatprep.mubr.msk.f32.mxu0 %vm1439_vm1, %v1438_v0  ;;  %1158 = vmatprep.mubr.msk.f32.mxu1 %vm1439_vm1, %v1438_v0 }
  0x72   : > { %1150 = vmatpush3.bf16.msra.mxu0 %v1257_v21  ;;  %1157 = vmatpush3.bf16.msra.mxu1 %v1258_v22 }
  0x75   : > { %1152 = vmatmul.mubr.msk.f32.vlgmr.msra.gmra.mxu0 %vm296_vm0, %v319_v23  ;;  %1159 = vmatmul.mubr.msk.f32.vlgmr.msra.gmra.mxu1 %vm296_vm0, %v320_v24 }
 0x11d   : > { %v403_v27 = vpop.f32.mrf.mxu0  ;;  %v456_v29 = vpop.f32.mrf.mxu1 }
 0x11e   : > { %v778_v28 = vadd.f32 %v403_v27, %v305_v25  ;;  %v779_v30 = vadd.f32 %v456_v29, %v306_v26 }
 0x11f   : > { %v1111_v31 = vpop.f32.mrf.mxu0  ;;  %v1118_v32 = vpop.f32.mrf.mxu1 }
 0x120   : > { %786 = vst.msk [vmem:[#allocation2] sm:$0xff] %vm296_vm0, %v778_v28  ;;  %787 = vst.msk [vmem:[#allocation2 + $0x8] sm:$0xff] %vm296_vm0, %v779_v30 }
 0x125   : > { %v509_v36 = vpop.f32.mrf.mxu0  ;;  %v562_v39 = vpop.f32.mrf.mxu1 }
 0x126   : > { %v780_v38 = vadd.f32 %v509_v36, %v307_v33  ;;  %v781_v41 = vadd.f32 %v562_v39, %v308_v34 }
 0x127   : > { %v797_v40 = vld [vmem:[#allocation2] sm:$0xff]  ;;  %v1125_v42 = vpop.f32.mrf.mxu0  ;;  %v798_v44 = vld [vmem:[#allocation2 + $0x8] sm:$0xff]  ;;  %v1132_v45 = vpop.f32.mrf.mxu1 }
 0x128   : > { %v861_v43 = vadd.f32 %v1063_v35, %v797_v40  ;;  %788 = vst.msk [vmem:[#allocation2 + $0x10] sm:$0xff] %vm296_vm0, %v780_v38  ;;  %v862_v46 = vadd.f32 %v1064_v37, %v798_v44  ;;  %789 = vst.msk [vmem:[#allocation2 + $0x18] sm:$0xff] %vm296_vm0, %v781_v41 }
 0x12a   : > { %869 = vst.msk [vmem:[%s1698_s29] sm:$0xff] %vm296_vm0, %v861_v43  ;;  %870 = vst.msk [vmem:[%s1698_s29 + $0x8] sm:$0xff] %vm296_vm0, %v862_v46 }
 0x12d   : > { %v615_v50 = vpop.f32.mrf.mxu0  ;;  %v668_v53 = vpop.f32.mrf.mxu1 }
 0x12e   : > { %v782_v52 = vadd.f32 %v615_v50, %v309_v47  ;;  %v783_v55 = vadd.f32 %v668_v53, %v310_v48 }
 0x12f   : > { %v799_v54 = vld [vmem:[#allocation2 + $0x10] sm:$0xff]  ;;  %v1139_v56 = vpop.f32.mrf.mxu0  ;;  %v800_v58 = vld [vmem:[#allocation2 + $0x18] sm:$0xff]  ;;  %v1146_v59 = vpop.f32.mrf.mxu1 }
 0x130   : > { %v863_v57 = vadd.f32 %v1065_v49, %v799_v54  ;;  %790 = vst.msk [vmem:[#allocation2 + $0x20] sm:$0xff] %vm296_vm0, %v782_v52  ;;  %v864_v60 = vadd.f32 %v1066_v51, %v800_v58  ;;  %791 = vst.msk [vmem:[#allocation2 + $0x28] sm:$0xff] %vm296_vm0, %v783_v55 }
 0x132   : > { %871 = vst.msk [vmem:[%s1698_s29 + $0x10] sm:$0xff] %vm296_vm0, %v863_v57  ;;  %872 = vst.msk [vmem:[%s1698_s29 + $0x18] sm:$0xff] %vm296_vm0, %v864_v60 }
 0x135   : > { %v721_v0 = vpop.f32.mrf.mxu0  ;;  %v774_v3 = vpop.f32.mrf.mxu1 }
 0x136   : > { %v784_v2 = vadd.f32 %v721_v0, %v311_v61  ;;  %v785_v5 = vadd.f32 %v774_v3, %v312_v62 }
 0x137   : > { %v801_v4 = vld [vmem:[#allocation2 + $0x20] sm:$0xff]  ;;  %v1153_v6 = vpop.f32.mrf.mxu0  ;;  %v802_v8 = vld [vmem:[#allocation2 + $0x28] sm:$0xff]  ;;  %v1160_v9 = vpop.f32.mrf.mxu1 }
 0x138   : > { %v865_v7 = vadd.f32 %v1067_v63, %v801_v4  ;;  %792 = vst.msk [vmem:[#allocation2 + $0x30] sm:$0xff] %vm296_vm0, %v784_v2  ;;  %v866_v10 = vadd.f32 %v1068_v1, %v802_v8  ;;  %793 = vst.msk [vmem:[#allocation2 + $0x38] sm:$0xff] %vm296_vm0, %v785_v5 }
 0x13a   : > { %873 = vst.msk [vmem:[%s1698_s29 + $0x20] sm:$0xff] %vm296_vm0, %v865_v7  ;;  %874 = vst.msk [vmem:[%s1698_s29 + $0x28] sm:$0xff] %vm296_vm0, %v866_v10 }
 0x13f   : > { %v803_v13 = vld [vmem:[#allocation2 + $0x30] sm:$0xff]  ;;  %v804_v15 = vld [vmem:[#allocation2 + $0x38] sm:$0xff] }
 0x140   : > { %v867_v14 = vadd.f32 %v1069_v11, %v803_v13  ;;  %v868_v16 = vadd.f32 %v1070_v12, %v804_v15 }
 0x142   : > { %875 = vst.msk [vmem:[%s1698_s29 + $0x30] sm:$0xff] %vm296_vm0, %v867_v14  ;;  %876 = vst.msk [vmem:[%s1698_s29 + $0x38] sm:$0xff] %vm296_vm0, %v868_v16 }
 0x143   : > { %1356 = shalt.err (!%p1353_p6)
}
 0x144   : > { %s1357_s1 = scalar_lea.hbm %s1727_s22, 1024  ;;  %s1361_s26 = scalar_lea.hbm %s1784_s3, 2048 }
 0x145   : > { %p1358_p7 = scmp.ne.s32.totalorder %s1727_s22, %s1357_s1  ;;  %p1362_p2 = scmp.lt.s32.totalorder %s1727_s22, %s1784_s3 }
 0x146   : > { %p1363_p8 = scmp.lt.s32.totalorder %s1361_s26, %s1357_s1 }
 0x147   : > { %p1359_p10 = pnand %p1358_p7, %p1518_p9 }
 0x148   : > { %p1364_p0 = por %p1363_p8, %p1362_p2 }
 0x149   : > { %p1360_p13 = pneg %p1359_p10 }
 0x14b   : > { %p1365_p1 = pnand %p1364_p0, %p1360_p13 }
 0x14d   : > { %1368 = shalt.err (!%p1365_p1)
}
 0x14e   : > { %s1441_s11 = smov 128   ;;  %s1442_s5 = smov 8  }
 0x14f   : > { %1167 = dma.vmem_to_hbm [thread:$0]  (%p1518_p9), %s1729_s7, 1024, %s1727_s22, %s878_s15, %s1441_s11, %s1441_s11, %s1442_s5  }
 0x150 PF: > { %s906_s23 = sand.u32 1, %s1407_s12   ;;  %p1180_p3 = pnand %p1023_p12, %p1525_p11 }
 0x151   : > { %s907_s18 = scalar_lea.sflag [#allocation5], %s906_s23 }
 0x152   : > { %p1181_p4 = pneg %p1180_p3 }
 0x154   : > { %1402 = dma.done.wait (%p1181_p4), %s907_s18, 1024  }
 0x155   : > { %1404 = vsyncadd (%p1181_p4), %s907_s18, 4294966272  ;;  %s22_s17 = sadd.s32 1, %s1427_s17   ;;  %s1800_s24 = sld [smem:[#allocation13_spill]] }
 0x156   : > { %p19_p5 = scmp.ge.s32.totalorder %s22_s17, 4   ;;  %s1801_s14 = sld [smem:[#allocation15_spill]] }
 0x157   : > { %s1802_s25 = sld [smem:[#allocation14_spill]]  ;;  %s1803_s12 = smov %s1411_s13 }
 0x158   : > { %s1805_s15 = smov %s1423_s16 }
 0x159   :  { %21 = sbr.rel (!%p19_p5) target bundleno = 11 (0xb), region = 109 }
 0x15b   : > { %s1804_s13 = smov %s1800_s24 }
 0x15d   : > { %s1806_s16 = smov %s1802_s25 }
 0x15e   :  { %912 = vsyncpa [#allocation4], 1 }
 0x15f   :  { %914 = vsyncpa [#allocation4 + $0x1], 1 }
 0x160   :  { %915 = vsyncpa [#allocation7], 1 }
 0x161   :  { %917 = vsyncpa [#allocation7 + $0x1], 1 }
 0x162   :  { %918 = vsyncpa [#allocation5], 1 }
 0x163   :  { %920 = vsyncpa [#allocation5 + $0x1], 1 }

</bundles_post_ra>
